<compile_context>
chip_gen: v6e
topology: v6e:2x2x1
jax: 0.10.0
libtpu: 0.0.40
codegen_flags: <defaults>
</compile_context>

<pallas_src>
import functools

import jax
import jax.numpy as jnp
from jax.experimental import pallas as pl
from jax.experimental.pallas import tpu as pltpu

SUBLANE = 8              # f32 sublane height
MAX_BATCH_TILE = 1024    # per-step VMEM footprint stays < ~2 MiB even at 1024 rows
MIN_SPLIT_BATCH = 256    # below this a single grid step is cheaper than splitting


def _round_up(n, m):
    return ((n + m - 1) // m) * m


def _cdiv(a, b):
    return (a + b - 1) // b


def mlp_kernel(x_ref, w1_ref, b1_ref, w2_ref, b2_ref, o_ref):
    # x_ref:  (TB, IN) f32   (one batch tile)
    # w1_ref: (IN, H)  bf16  (VMEM-resident across the grid)
    # b1_ref: (1, H)   f32
    # w2_ref: (H, O)   bf16  (resident)
    # b2_ref: (1, O)   f32
    # o_ref:  (TB, O)  f32   (O is the full last dim; tiny writeback)
    x = x_ref[...].astype(jnp.bfloat16)          # bf16 cast in-kernel, no HBM copy
    h = jnp.dot(x, w1_ref[...], preferred_element_type=jnp.float32)
    h = jnp.maximum(h + b1_ref[...], 0.0)        # fused bias + ReLU on f32 accumulator
    y = jnp.dot(h.astype(jnp.bfloat16), w2_ref[...],
                preferred_element_type=jnp.float32)
    o_ref[...] = (y + b2_ref[...]).astype(o_ref.dtype)


def pack_params(w1, b1, w2, b2):
    """One-time param packing (hoisted out of the per-call hot path):
    weights -> bf16 (MXU-native operands), biases -> (1, N) f32."""
    return (jnp.asarray(w1, jnp.bfloat16),
            jnp.asarray(b1, jnp.float32).reshape(1, -1),
            jnp.asarray(w2, jnp.bfloat16),
            jnp.asarray(b2, jnp.float32).reshape(1, -1))


def _choose_batch_tile(B, block_batch):
    """Pick (TB, B_padded). TB == B (block equals full dim, no padding, no 8-row
    rule) for small batches; otherwise a multiple of 8 capped at MAX_BATCH_TILE,
    with grid >= 2 so both v7x TensorCores are used for large B."""
    if block_batch is not None:
        TB = max(SUBLANE, _round_up(block_batch, SUBLANE))
        if TB >= B:
            return B, B
        return TB, _round_up(B, TB)
    if B < MIN_SPLIT_BATCH:
        return B, B
    ntiles = max(2, _cdiv(B, MAX_BATCH_TILE))
    TB = _round_up(_cdiv(B, ntiles), SUBLANE)
    return TB, _round_up(B, TB)


@functools.partial(jax.jit, static_argnames=("block_batch",))
def linear_qnet_forward(x, params, *, block_batch=None):
    """Forward pass of Linear_QNet.

    x:      (B, input_size) f32
    params: output of pack_params(w1, b1, w2, b2)
    Returns (B, output_size) f32.
    """
    w1, b1, w2, b2 = params
    B, IN = x.shape
    H = w1.shape[1]
    O = w2.shape[1]

    TB, B_p = _choose_batch_tile(B, block_batch)
    x_in = x if B_p == B else jnp.pad(x, ((0, B_p - B), (0, 0)))

    grid = (B_p // TB,)

    out_p = pl.pallas_call(
        mlp_kernel,
        out_shape=jax.ShapeDtypeStruct((B_p, O), jnp.float32),
        grid_spec=pltpu.PrefetchScalarGridSpec(
            num_scalar_prefetch=0,
            grid=grid,
            in_specs=[
                pl.BlockSpec((TB, IN), lambda i: (i, 0)),   # x: tiled over batch
                pl.BlockSpec((IN, H), lambda i: (0, 0)),    # w1: resident
                pl.BlockSpec((1, H), lambda i: (0, 0)),     # b1: resident
                pl.BlockSpec((H, O), lambda i: (0, 0)),     # w2: resident
                pl.BlockSpec((1, O), lambda i: (0, 0)),     # b2: resident
            ],
            out_specs=pl.BlockSpec((TB, O), lambda i: (i, 0)),
        ),
        compiler_params=pltpu.CompilerParams(
            # batch tiles are independent -> shards across v7x's 2 TensorCores
            dimension_semantics=("parallel",),
        ),
    )(x_in, w1, b1, w2, b2)

    return out_p if B_p == B else out_p[:B]


def init_params(key, input_size, hidden_size, output_size):
    # Deterministic init mimicking nn.Linear: U(-1/sqrt(fan_in), 1/sqrt(fan_in))
    k1, k2, k3, k4 = jax.random.split(key, 4)
    lim1 = 1.0 / jnp.sqrt(jnp.float32(input_size))
    lim2 = 1.0 / jnp.sqrt(jnp.float32(hidden_size))
    w1 = jax.random.uniform(k1, (input_size, hidden_size), jnp.float32, -lim1, lim1)
    b1 = jax.random.uniform(k2, (1, hidden_size), jnp.float32, -lim1, lim1)
    w2 = jax.random.uniform(k3, (hidden_size, output_size), jnp.float32, -lim2, lim2)
    b2 = jax.random.uniform(k4, (1, output_size), jnp.float32, -lim2, lim2)
    return w1, b1, w2, b2


# TODO(synk): Linear_QNet.save()/load() are host-side torch.save/load of the
# state_dict; file I/O has no Pallas equivalent and is intentionally omitted.

if __name__ == "__main__":
    # Small shapes consistent with the module's forward: x is (batch, input_size).
    batch, input_size, hidden_size, output_size = 8, 16, 32, 4

    key = jax.random.PRNGKey(0)
    kx, kp = jax.random.split(key)
    x = jax.random.normal(kx, (batch, input_size), jnp.float32)
    w1, b1, w2, b2 = init_params(kp, input_size, hidden_size, output_size)

    params = pack_params(w1, b1, w2, b2)   # one-time packing (bf16 weights)
    out = linear_qnet_forward(x, params)
    out = jax.block_until_ready(out)
    assert out.shape == (batch, output_size)

    # Pure-JAX f32 reference (kernel uses bf16 MXU operands with f32 accumulation,
    # so compare with a bf16-appropriate tolerance).
    ref_f32 = jnp.maximum(x @ w1 + b1, 0.0) @ w2 + b2
    assert jnp.allclose(out, ref_f32, atol=5e-2, rtol=5e-2)

    # Tighter check against a reference that applies the same bf16 casts.
    xb = x.astype(jnp.bfloat16)
    w1b, b1f, w2b, b2f = params
    h_ref = jnp.maximum(
        jnp.dot(xb, w1b, preferred_element_type=jnp.float32) + b1f, 0.0)
    ref_bf16 = jnp.dot(h_ref.astype(jnp.bfloat16), w2b,
                       preferred_element_type=jnp.float32) + b2f
    assert jnp.allclose(out, ref_bf16, atol=1e-3, rtol=1e-3)

    print("KERNEL_OK")
</pallas_src>

<mosaic_0001>
module attributes {stable_mosaic.version = 11 : i64} {
  func.func @mlp_kernel(%arg0: i32, %arg1: memref<8x16xf32, #tpu.memory_space<vmem>>, %arg2: memref<16x32xbf16, #tpu.memory_space<vmem>>, %arg3: memref<1x32xf32, #tpu.memory_space<vmem>>, %arg4: memref<32x4xbf16, #tpu.memory_space<vmem>>, %arg5: memref<1x4xf32, #tpu.memory_space<vmem>>, %arg6: memref<8x4xf32, #tpu.memory_space<vmem>>) attributes {dimension_semantics = [#tpu.dimension_semantics<parallel>], iteration_bounds = array<i64: 1>, scalar_prefetch = 0 : i64, scratch_operands = 0 : i64, tpu.core_type = #tpu.core_type<tc>, window_params = [{transform_indices = @transform_0, window_bounds = array<i64: 8, 16>}, {pipeline_mode = #tpu.pipeline_mode<synchronous>, transform_indices = @transform_1, window_bounds = array<i64: 16, 32>}, {pipeline_mode = #tpu.pipeline_mode<synchronous>, transform_indices = @transform_2, window_bounds = array<i64: 1, 32>}, {pipeline_mode = #tpu.pipeline_mode<synchronous>, transform_indices = @transform_3, window_bounds = array<i64: 32, 4>}, {pipeline_mode = #tpu.pipeline_mode<synchronous>, transform_indices = @transform_4, window_bounds = array<i64: 1, 4>}, {transform_indices = @transform_5, window_bounds = array<i64: 8, 4>}]} {
    %c0 = arith.constant 0 : index
    %c0_0 = arith.constant 0 : index
    %0 = vector.load %arg1[%c0, %c0_0] : memref<8x16xf32, #tpu.memory_space<vmem>>, vector<8x16xf32>
    %1 = arith.truncf %0 : vector<8x16xf32> to vector<8x16xbf16>
    %c0_1 = arith.constant 0 : index
    %c0_2 = arith.constant 0 : index
    %2 = vector.load %arg2[%c0_1, %c0_2] : memref<16x32xbf16, #tpu.memory_space<vmem>>, vector<16x32xbf16>
    %cst = arith.constant dense<0.000000e+00> : vector<8x32xf32>
    %3 = tpu.matmul %1, %2, %cst {dimension_numbers = #tpu.dot_dimension_numbers<[1], [0], [0], [1], [0, 0, 1, 1], [], []>} : vector<8x16xbf16>, vector<16x32xbf16>, vector<8x32xf32> -> vector<8x32xf32>
    %c0_3 = arith.constant 0 : index
    %c0_4 = arith.constant 0 : index
    %4 = vector.load %arg3[%c0_3, %c0_4] : memref<1x32xf32, #tpu.memory_space<vmem>>, vector<1x32xf32>
    %5 = vector.broadcast %4 : vector<1x32xf32> to vector<8x32xf32>
    %6 = arith.addf %3, %5 : vector<8x32xf32>
    %cst_5 = arith.constant 0.000000e+00 : f32
    %7 = vector.broadcast %cst_5 : f32 to vector<8x32xf32>
    %8 = arith.maximumf %6, %7 : vector<8x32xf32>
    %9 = arith.truncf %8 : vector<8x32xf32> to vector<8x32xbf16>
    %c0_6 = arith.constant 0 : index
    %c0_7 = arith.constant 0 : index
    %10 = vector.load %arg4[%c0_6, %c0_7] : memref<32x4xbf16, #tpu.memory_space<vmem>>, vector<32x4xbf16>
    %cst_8 = arith.constant dense<0.000000e+00> : vector<8x4xf32>
    %11 = tpu.matmul %9, %10, %cst_8 {dimension_numbers = #tpu.dot_dimension_numbers<[1], [0], [0], [1], [0, 0, 1, 1], [], []>} : vector<8x32xbf16>, vector<32x4xbf16>, vector<8x4xf32> -> vector<8x4xf32>
    %c0_9 = arith.constant 0 : index
    %c0_10 = arith.constant 0 : index
    %12 = vector.load %arg5[%c0_9, %c0_10] : memref<1x4xf32, #tpu.memory_space<vmem>>, vector<1x4xf32>
    %13 = vector.broadcast %12 : vector<1x4xf32> to vector<8x4xf32>
    %14 = arith.addf %11, %13 : vector<8x4xf32>
    %c0_11 = arith.constant 0 : index
    %c0_12 = arith.constant 0 : index
    %15 = vector.load %arg6[%c0_11, %c0_12] : memref<8x4xf32, #tpu.memory_space<vmem>>, vector<8x4xf32>
    tpu.vector_store %arg6[%c0_11, %c0_12], %14 {strides = array<i32>} : memref<8x4xf32, #tpu.memory_space<vmem>>, vector<8x4xf32>,
    return
  }
  func.func @transform_0(%arg0: i32) -> (i32, i32) {
    %c0_i32 = arith.constant 0 : i32
    %c0_i32_0 = arith.constant 0 : i32
    return %arg0, %c0_i32 : i32, i32
  }
  func.func @transform_1(%arg0: i32) -> (i32, i32) {
    %c0_i32 = arith.constant 0 : i32
    %c0_i32_0 = arith.constant 0 : i32
    %c0_i32_1 = arith.constant 0 : i32
    return %c0_i32, %c0_i32_0 : i32, i32
  }
  func.func @transform_2(%arg0: i32) -> (i32, i32) {
    %c0_i32 = arith.constant 0 : i32
    %c0_i32_0 = arith.constant 0 : i32
    %c0_i32_1 = arith.constant 0 : i32
    return %c0_i32, %c0_i32_0 : i32, i32
  }
  func.func @transform_3(%arg0: i32) -> (i32, i32) {
    %c0_i32 = arith.constant 0 : i32
    %c0_i32_0 = arith.constant 0 : i32
    %c0_i32_1 = arith.constant 0 : i32
    return %c0_i32, %c0_i32_0 : i32, i32
  }
  func.func @transform_4(%arg0: i32) -> (i32, i32) {
    %c0_i32 = arith.constant 0 : i32
    %c0_i32_0 = arith.constant 0 : i32
    %c0_i32_1 = arith.constant 0 : i32
    return %c0_i32, %c0_i32_0 : i32, i32
  }
  func.func @transform_5(%arg0: i32) -> (i32, i32) {
    %c0_i32 = arith.constant 0 : i32
    %c0_i32_0 = arith.constant 0 : i32
    return %arg0, %c0_i32 : i32, i32
  }
}

</mosaic_0001>

<bundles_post_ra>
// kernel: linear_qnet_forward.1
= control target key start
LH: loop header
LB: loop body
LE: loop exit
PB: predicated region body
PF: predicated region fallthrough
CT: control target
= control target key end

     0   :  { %v188_v0 = vmov 0.0   ;;  %vm189_vm0 = vmmov 0   ;;  %vm38_vm1 = vcmask 130048   ;;  %vm107_vm2 = vcmask 261120   ;;  %s241_s1 = inlined_call_operand.vmem [shape: bf16[16,32], index: 1, kind: input, shape index: {}]   ;;  %s242_s0 = inlined_call_operand.vmem [shape: f32[8,16], index: 0, kind: input, shape index: {}]   ;;  %s243_s3 = inlined_call_operand.vmem [shape: bf16[32,4], index: 3, kind: input, shape index: {}]   ;;  %s244_s2 = inlined_call_operand.vmem [shape: f32[1,32], index: 2, kind: input, shape index: {}]   ;;  %s245_s4 = inlined_call_operand.vmem [shape: f32[1,4], index: 4, kind: input, shape index: {}]   ;;  %s246_s5 = inlined_call_operand.vmem [shape: f32[8,4], index: 5, kind: output, shape index: {}]  }
   0x1   :  { %169 = vmatprep.subr.bf16.mxu0 %v188_v0  ;;  %v185_v1 = vld [vmem:[%s241_s1] sm:$0xff]   ;;  %171 = vmatprep.mubr.msk.bf16.mxu0 %vm189_vm0, %v188_v0  ;;  %v186_v4 = vld [vmem:[%s243_s3 + $0x8] sm:$0xff]   ;;  %vm151_vm3 = vcmask 31744  }
   0x2   :  { %v21_v2 = vld [vmem:[%s242_s0] sm:$0xff]  ;;  %175 = vmatprep.subr.bf16.mxu1 %v188_v0  ;;  %179 = vmatprep.mubr.msk.bf16.mxu1 %vm189_vm0, %v188_v0 }
   0x3   :  { %170 = vmatpush3.bf16.msra.mxu0 %v185_v1  ;;  %v22_v3 = vpack.c.bf16 %v21_v2, %v21_v2  ;;  %176 = vmatpush3.bf16.msra.mxu1 %v186_v4  ;;  %v187_v5 = vld [vmem:[%s243_s3] sm:$0xff]  }
   0x4   :  { %177 = vmatprep.subr.bf16.mxu1 %v188_v0  ;;  %v157_v6 = vld [vmem:[%s244_s2] ss:$0 sm:$0xff] }
   0x5   :  { %v160_v14 = vld [vmem:[%s245_s4] ss:$0 sm:$0xff] }
   0x6   :  { %172 = vmatmul.mubr.msk.bf16.vlgmr.msra.gmra.mxu0 %vm38_vm1, %v22_v3 }
   0x7   :  { %178 = vmatpush3.bf16.msra.mxu1 %v187_v5 }
  0xc6   :  { %v76_v7 = vpop.f32.mrf.mxu0 }
  0xc7   :  { %v77_v8 = vadd.f32 %v157_v6, %v76_v7 }
  0xc8   :  { %v173_v9 = vpop.f32.mrf.mxu0 }
  0xc9   :  { %v82_v10 = vmax.f32 %v77_v8, 0.0 }
  0xca   :  { %v79_v11 = vpop.f32.mrf.mxu0 }
  0xcb   :  { %v83_v12 = vpack.c.bf16 %v82_v10, %v82_v10 }
  0xcc   :  { %v174_v13 = vpop.f32.mrf.mxu0 }
  0xcd   :  { %180 = vmatmul.mubr.msk.bf16.vlgmr.msra.gmra.mxu1 %vm107_vm2, %v83_v12 }
 0x18d   :  { %v145_v15 = vpop.f32.mrf.mxu1 }
 0x18e   :  { %v146_v16 = vadd.f32 %v160_v14, %v145_v15 }
 0x18f   :  { %v181_v17 = vpop.f32.mrf.mxu1 }
 0x190   :  { %152 = vst.msk [vmem:[%s246_s5] sm:$0xff] %vm151_vm3, %v146_v16 }
 0x191   :  { %v148_v18 = vpop.f32.mrf.mxu1 }
 0x193   :  { %v182_v19 = vpop.f32.mrf.mxu1 }

</bundles_post_ra>
